<compile_context>
chip_gen: v7x
topology: tpu7x:2x2x1
jax: 0.10.0
libtpu: 0.0.40
codegen_flags: <defaults>
</compile_context>

<pallas_src>
import math

import jax
import jax.numpy as jnp
from jax.experimental import pallas as pl
from jax.experimental.pallas import tpu as pltpu


def _gaus2d_kernel(rowp_ref, gxy_ref, o_ref):
    """Evaluates one (TR, Lp) output tile.

    rowp_ref: (TR, 6) f32 per-output-row params [x, y_eff, A, B, C, clamp].
    gxy_ref : (2, Lp) f32; row 0 = grid_x per lane, row 1 = grid_y per lane
              within one chunk (the chunk's image-row offset is folded into
              y_eff on the host side).
    o_ref   : (TR, Lp) output tile.  exponent = A*dx^2 + B*dy^2 + C*dx*dy,
              clamped from above by `clamp`, then exp().
    """
    tr, lp = o_ref.shape
    p = rowp_ref[...]                                   # (TR, 6)
    g = gxy_ref[...]                                    # (2, Lp)
    gx = jnp.broadcast_to(g[0:1, :], (tr, lp))
    gy = jnp.broadcast_to(g[1:2, :], (tr, lp))
    dx = gx - p[:, 0:1]
    dy = gy - p[:, 1:2]
    z = dx * (p[:, 2:3] * dx + p[:, 4:5] * dy) + p[:, 3:4] * (dy * dy)
    z = jnp.minimum(z, p[:, 5:6])
    o_ref[...] = jnp.exp(z).astype(o_ref.dtype)


# ---- per-batch coefficient precompute (tiny (B, 6) glue; keeps every divide,
# ---- sqrt and rotation off the per-pixel path) ------------------------------
def _prep_rho(inp, min_std, max_std, pos_limit):
    x = jnp.clip(inp[:, 0], -pos_limit, pos_limit)
    y = jnp.clip(inp[:, 1], -pos_limit, pos_limit)
    var_x = jnp.clip(inp[:, 2], min_std * min_std, max_std * max_std)
    var_y = jnp.clip(inp[:, 3], min_std * min_std, max_std * max_std)
    covar = jnp.clip(inp[:, 4], -max_std * max_std, max_std * max_std)
    inv_vx = 1.0 / var_x
    inv_vy = 1.0 / var_y
    denom = jnp.maximum(2.0 * (1.0 - covar * covar * inv_vx * inv_vy), 1e-8)
    s3 = -1.0 / denom                        # < 0
    a = s3 * inv_vx
    b = s3 * inv_vy
    c = -2.0 * covar * s3 * inv_vx * inv_vy
    # torch: exp(s3 * max(Z, 1e-8)) == exp(min(s3*Z, s3*1e-8))  (s3 < 0),
    # so after folding s3 the clamp becomes a *min*.
    clamp = 1e-8 * s3
    return jnp.stack([x, y, a, b, c, clamp], axis=1).astype(jnp.float32)


def _prep_rot(inp, min_std, max_std, pos_limit):
    x = jnp.clip(inp[:, 0], -pos_limit, pos_limit)
    y = jnp.clip(inp[:, 1], -pos_limit, pos_limit)
    std_x = jnp.clip(inp[:, 2], min_std, max_std)
    std_y = jnp.clip(inp[:, 3], min_std, max_std)
    rot_a = inp[:, 4]
    rot_b = inp[:, 5]
    scale = jnp.sqrt(jnp.maximum(rot_a * rot_a + rot_b * rot_b, 1e-16))
    rot_a = rot_a / scale
    rot_b = rot_b / scale
    p = -0.5 / (std_x * std_x)
    q = -0.5 / (std_y * std_y)
    # -(z_x + z_y)/2 expanded in dx, dy:  p*x_rot^2 + q*y_rot^2
    a = p * rot_a * rot_a + q * rot_b * rot_b
    b = p * rot_b * rot_b + q * rot_a * rot_a
    c = 2.0 * rot_a * rot_b * (q - p)
    clamp = jnp.full_like(a, jnp.inf)        # no clamp in the rot path
    return jnp.stack([x, y, a, b, c, clamp], axis=1).astype(jnp.float32)


# ---- tiling -----------------------------------------------------------------
def _largest_divisor_leq(n, cap):
    cap = max(1, min(n, cap))
    best = 1
    i = 1
    while i * i <= n:
        if n % i == 0:
            for d in (i, n // i):
                if d <= cap and d > best:
                    best = d
        i += 1
    return best


def _choose_tiles(B, H, W, elem_bytes, max_block_bytes):
    """Returns (Lp, R, TR): lane tile, number of output rows, rows per block."""
    P = H * W
    bp = B * P
    g = math.gcd(W, 128)
    unit = W * (128 // g)                 # smallest Lp that is a multiple of W and 128
    if P % unit == 0:
        # Prefer enough rows for dense sublanes (>=8) and, for big problems,
        # >=16 rows so the grid can split across v7x's two TensorCores.
        min_rows = 16 if bp * elem_bytes > (1 << 20) else 8
        lp_cap = min(max(1, bp // min_rows),
                     max(1, max_block_bytes // (8 * elem_bytes)))
        lp_cap = max(lp_cap, unit)
        d = _largest_divisor_leq(P // unit, lp_cap // unit)
        Lp = d * unit
    else:
        # TODO(synk): planes whose pixel count is not a multiple of lcm(W,128)
        # fall back to one full-width row per batch element; for very large
        # such planes this block can exceed the ~2 MiB target.
        Lp = P
    R = B * (P // Lp)
    if R <= 8:
        TR = R
    else:
        TR = min(R, max(1, max_block_bytes // (Lp * elem_bytes)))
        TR = max(8, (TR // 8) * 8)
    # v7x occupancy: a big single-block problem should expose >=2 parallel steps.
    if -(-R // TR) < 2 and R * Lp * elem_bytes > (1 << 20) and R >= 16:
        TR = max(8, ((R // 2) // 8) * 8)
    return Lp, R, TR


class ComplexGaus2D:
    def __init__(self, size=None, position_limit=1.0, out_dtype=jnp.float32):
        self.size = tuple(size) if size is not None else None
        self.position_limit = float(position_limit)
        self.min_std = 0.1
        self.max_std = 0.5
        # out_dtype=jnp.bfloat16 halves HBM write traffic (useful on v5e,
        # which is write-bandwidth bound for this kernel); math stays f32.
        self.out_dtype = out_dtype
        self.grid_x = jnp.zeros((1, 1), jnp.float32)
        self.grid_y = jnp.zeros((1, 1), jnp.float32)
        if size is not None:
            self.min_std = 1.0 / min(size)
            self.update_grid(tuple(size))

    def update_grid(self, size):
        size = tuple(size)
        if size != self.grid_x.shape:
            self.size = size
            self.min_std = 1.0 / min(size)
            H, W = size
            # Kept only for parity with the torch buffers / reference checks;
            # the Pallas kernel uses the tiny flattened (2, Lp) grid instead.
            gx = jnp.arange(W, dtype=jnp.float32) / (W - 1) * 2.0 - 1.0
            gy = jnp.arange(H, dtype=jnp.float32) / (H - 1) * 2.0 - 1.0
            self.grid_x = jnp.broadcast_to(gx[None, :], (H, W))
            self.grid_y = jnp.broadcast_to(gy[:, None], (H, W))

    def __call__(self, inp, _max_block_bytes=2 * 1024 * 1024):
        B, C = inp.shape
        assert 5 <= C <= 6
        H, W = self.size
        P = H * W
        eb = jnp.dtype(self.out_dtype).itemsize

        if C == 5:
            base = _prep_rho(inp, self.min_std, self.max_std,
                             self.position_limit)
        else:
            base = _prep_rot(inp, self.min_std, self.max_std,
                             self.position_limit)

        Lp, R, TR = _choose_tiles(B, H, W, eb, _max_block_bytes)
        rows_per_batch = P // Lp
        img_rows_per_row = Lp // W

        # Per-output-row params: repeat per-batch params and fold each chunk's
        # image-row offset into y (y_eff = y - row0 * row_scale) so the per-lane
        # grid is identical for every chunk.
        rowp = jnp.repeat(base, rows_per_batch, axis=0)          # (R, 6)
        if rows_per_batch > 1:
            # rows_per_batch > 1 implies H > 1, so row_scale is finite here.
            row_scale = 2.0 / (H - 1)
            row0 = (jnp.arange(rows_per_batch, dtype=jnp.float32)
                    * float(img_rows_per_row))
            y_eff = base[:, 1:2] - row0[None, :] * row_scale      # (B, rpb)
            rowp = rowp.at[:, 1].set(y_eff.reshape(-1))

        # Per-lane coordinates for one Lp-wide chunk (chunk starts are
        # multiples of W, so this is shared by every grid step).
        # TODO(synk): H == 1 or W == 1 yields NaN coordinates, matching the
        # torch module's arange/(W-1) grid construction.
        lane = jnp.arange(Lp)
        gx_l = (lane % W).astype(jnp.float32) / (W - 1) * 2.0 - 1.0
        gy_l = (lane // W).astype(jnp.float32) / (H - 1) * 2.0 - 1.0
        gxy = jnp.stack([gx_l, gy_l], axis=0)                     # (2, Lp)

        nsteps = pl.cdiv(R, TR)
        out = pl.pallas_call(
            _gaus2d_kernel,
            out_shape=jax.ShapeDtypeStruct((R, Lp), self.out_dtype),
            grid_spec=pltpu.PrefetchScalarGridSpec(
                num_scalar_prefetch=0,
                grid=(nsteps,),
                in_specs=[
                    pl.BlockSpec((TR, 6), lambda i: (i, 0)),
                    pl.BlockSpec((2, Lp), lambda i: (0, 0)),
                ],
                out_specs=pl.BlockSpec((TR, Lp), lambda i: (i, 0)),
            ),
            compiler_params=pltpu.CompilerParams(
                dimension_semantics=("parallel",)),
        )(rowp, gxy)
        return out.reshape(B, 1, H, W)


# ---------------- plain-JAX references (torch semantics, for verification) ---
def _ref_from_rho(inp, grid_x, grid_y, min_std, max_std, pos_limit):
    x = jnp.clip(inp[:, 0:1], -pos_limit, pos_limit)[:, :, None, None]
    y = jnp.clip(inp[:, 1:2], -pos_limit, pos_limit)[:, :, None, None]
    var_x = jnp.clip(inp[:, 2:3], min_std**2, max_std**2)[:, :, None, None]
    var_y = jnp.clip(inp[:, 3:4], min_std**2, max_std**2)[:, :, None, None]
    covar = jnp.clip(inp[:, 4:5], -max_std**2, max_std**2)[:, :, None, None]
    gx = grid_x[None, None]
    gy = grid_y[None, None]
    z_x = (gx - x) ** 2 / var_x
    z_y = (gy - y) ** 2 / var_y
    z_xy = 2 * covar * (gx - x) * (gy - y) / (var_x * var_y)
    Z = jnp.maximum(z_x + z_y - z_xy, 1e-8)
    denom = jnp.maximum(2 * (1 - covar**2 / (var_x * var_y)), 1e-8)
    return jnp.exp(-Z / denom)


def _ref_from_rot(inp, grid_x, grid_y, min_std, max_std, pos_limit):
    x = inp[:, 0:1][:, :, None, None]
    y = inp[:, 1:2][:, :, None, None]
    std_x = inp[:, 2:3][:, :, None, None]
    std_y = inp[:, 3:4][:, :, None, None]
    rot_a = inp[:, 4:5][:, :, None, None]
    rot_b = inp[:, 5:6][:, :, None, None]
    scale = jnp.sqrt(jnp.clip(rot_a**2 + rot_b**2, 1e-16))
    rot_a = rot_a / scale
    rot_b = rot_b / scale
    x = jnp.clip(x, -pos_limit, pos_limit)
    y = jnp.clip(y, -pos_limit, pos_limit)
    std_x = jnp.clip(std_x, min_std, max_std)
    std_y = jnp.clip(std_y, min_std, max_std)
    dx = grid_x[None, None] - x
    dy = grid_y[None, None] - y
    x_rot = rot_a * dx - rot_b * dy
    y_rot = rot_b * dx + rot_a * dy
    z_x = x_rot**2 / std_x**2
    z_y = y_rot**2 / std_y**2
    return jnp.exp(-(z_x + z_y) / 2)


if __name__ == "__main__":
    key = jax.random.PRNGKey(0)
    k1, k2, k3, k6, k7 = jax.random.split(key, 5)

    # --- 5-channel (from_rho) and 6-channel (from_rot), B=2, 16x16 -----------
    B, H, W = 2, 16, 16
    mod = ComplexGaus2D(size=(H, W), position_limit=1.0)

    # Well-conditioned covariance so the comparison is not dominated by the
    # 1e-8 denom-clamp razor edge (that degenerate regime collapses to ~0 in
    # both implementations anyway).
    xy = jax.random.uniform(k1, (B, 2), minval=-0.8, maxval=0.8)
    var = jax.random.uniform(k2, (B, 2), minval=0.02, maxval=0.2)
    rho = jax.random.uniform(k3, (B, 1), minval=-0.5, maxval=0.5)
    covar = rho * jnp.sqrt(var[:, 0:1] * var[:, 1:2])
    x5 = jnp.concatenate([xy, var, covar], axis=1).astype(jnp.float32)
    out5 = jax.block_until_ready(mod(x5))
    ref5 = _ref_from_rho(x5, mod.grid_x, mod.grid_y,
                         mod.min_std, mod.max_std, mod.position_limit)
    assert out5.shape == (B, 1, H, W)
    assert jnp.allclose(out5, ref5, rtol=1e-3, atol=1e-5), (
        float(jnp.max(jnp.abs(out5 - ref5))))

    x6 = jax.random.normal(k6, (B, 6), dtype=jnp.float32)
    out6 = jax.block_until_ready(mod(x6))
    ref6 = _ref_from_rot(x6, mod.grid_x, mod.grid_y,
                         mod.min_std, mod.max_std, mod.position_limit)
    assert out6.shape == (B, 1, H, W)
    assert jnp.allclose(out6, ref6, rtol=1e-3, atol=1e-5), (
        float(jnp.max(jnp.abs(out6 - ref6))))

    # --- larger batch: exercises a multi-step, ragged "parallel" grid --------
    B2 = 20
    ka, kb, kc = jax.random.split(k7, 3)
    xy2 = jax.random.uniform(ka, (B2, 2), minval=-0.8, maxval=0.8)
    var2 = jax.random.uniform(kb, (B2, 2), minval=0.02, maxval=0.2)
    rho2 = jax.random.uniform(kc, (B2, 1), minval=-0.5, maxval=0.5)
    covar2 = rho2 * jnp.sqrt(var2[:, 0:1] * var2[:, 1:2])
    x5b = jnp.concatenate([xy2, var2, covar2], axis=1).astype(jnp.float32)
    out5b = jax.block_until_ready(mod(x5b))
    ref5b = _ref_from_rho(x5b, mod.grid_x, mod.grid_y,
                          mod.min_std, mod.max_std, mod.position_limit)
    assert out5b.shape == (B2, 1, H, W)
    assert jnp.allclose(out5b, ref5b, rtol=1e-3, atol=1e-5), (
        float(jnp.max(jnp.abs(out5b - ref5b))))

    # --- odd plane size: W not a power of two, H*W not a multiple of 128 -----
    H2, W2 = 24, 20
    mod2 = ComplexGaus2D(size=(H2, W2), position_limit=1.0)
    x6b = jax.random.normal(jax.random.PRNGKey(1), (3, 6), dtype=jnp.float32)
    out6b = jax.block_until_ready(mod2(x6b))
    ref6b = _ref_from_rot(x6b, mod2.grid_x, mod2.grid_y,
                          mod2.min_std, mod2.max_std, mod2.position_limit)
    assert out6b.shape == (3, 1, H2, W2)
    assert jnp.allclose(out6b, ref6b, rtol=1e-3, atol=1e-5), (
        float(jnp.max(jnp.abs(out6b - ref6b))))

    print("KERNEL_OK")
</pallas_src>

<mosaic_0001>
module attributes {stable_mosaic.version = 11 : i64} {
  func.func @_gaus2d_kernel(%arg0: i32, %arg1: memref<4x6xf32, #tpu.memory_space<vmem>>, %arg2: memref<2x128xf32, #tpu.memory_space<vmem>>, %arg3: memref<4x128xf32, #tpu.memory_space<vmem>>) attributes {dimension_semantics = [#tpu.dimension_semantics<parallel>], iteration_bounds = array<i64: 1>, scalar_prefetch = 0 : i64, scratch_operands = 0 : i64, tpu.core_type = #tpu.core_type<tc>, window_params = [{transform_indices = @transform_0, window_bounds = array<i64: 4, 6>}, {pipeline_mode = #tpu.pipeline_mode<synchronous>, transform_indices = @transform_1, window_bounds = array<i64: 2, 128>}, {transform_indices = @transform_2, window_bounds = array<i64: 4, 128>}]} {
    %c0 = arith.constant 0 : index
    %c0_0 = arith.constant 0 : index
    %0 = vector.load %arg1[%c0, %c0_0] : memref<4x6xf32, #tpu.memory_space<vmem>>, vector<4x6xf32>
    %c0_1 = arith.constant 0 : index
    %c0_2 = arith.constant 0 : index
    %1 = vector.load %arg2[%c0_1, %c0_2] : memref<2x128xf32, #tpu.memory_space<vmem>>, vector<2x128xf32>
    %2 = vector.extract_strided_slice %1 {offsets = [0, 0], sizes = [1, 128], strides = [1, 1]} : vector<2x128xf32> to vector<1x128xf32>
    %3 = vector.shape_cast %2 : vector<1x128xf32> to vector<1x128xf32>
    %4 = vector.broadcast %3 : vector<1x128xf32> to vector<4x128xf32>
    %5 = vector.extract_strided_slice %1 {offsets = [1, 0], sizes = [1, 128], strides = [1, 1]} : vector<2x128xf32> to vector<1x128xf32>
    %6 = vector.shape_cast %5 : vector<1x128xf32> to vector<1x128xf32>
    %7 = vector.broadcast %6 : vector<1x128xf32> to vector<4x128xf32>
    %8 = vector.extract_strided_slice %0 {offsets = [0, 0], sizes = [4, 1], strides = [1, 1]} : vector<4x6xf32> to vector<4x1xf32>
    %9 = vector.broadcast %8 : vector<4x1xf32> to vector<4x128xf32>
    %10 = arith.subf %4, %9 : vector<4x128xf32>
    %11 = vector.extract_strided_slice %0 {offsets = [0, 1], sizes = [4, 1], strides = [1, 1]} : vector<4x6xf32> to vector<4x1xf32>
    %12 = vector.broadcast %11 : vector<4x1xf32> to vector<4x128xf32>
    %13 = arith.subf %7, %12 : vector<4x128xf32>
    %14 = vector.extract_strided_slice %0 {offsets = [0, 2], sizes = [4, 1], strides = [1, 1]} : vector<4x6xf32> to vector<4x1xf32>
    %15 = vector.broadcast %14 : vector<4x1xf32> to vector<4x128xf32>
    %16 = arith.mulf %15, %10 : vector<4x128xf32>
    %17 = vector.extract_strided_slice %0 {offsets = [0, 4], sizes = [4, 1], strides = [1, 1]} : vector<4x6xf32> to vector<4x1xf32>
    %18 = vector.broadcast %17 : vector<4x1xf32> to vector<4x128xf32>
    %19 = arith.mulf %18, %13 : vector<4x128xf32>
    %20 = arith.addf %16, %19 : vector<4x128xf32>
    %21 = arith.mulf %10, %20 : vector<4x128xf32>
    %22 = vector.extract_strided_slice %0 {offsets = [0, 3], sizes = [4, 1], strides = [1, 1]} : vector<4x6xf32> to vector<4x1xf32>
    %23 = arith.mulf %13, %13 : vector<4x128xf32>
    %24 = vector.broadcast %22 : vector<4x1xf32> to vector<4x128xf32>
    %25 = arith.mulf %24, %23 : vector<4x128xf32>
    %26 = arith.addf %21, %25 : vector<4x128xf32>
    %27 = vector.extract_strided_slice %0 {offsets = [0, 5], sizes = [4, 1], strides = [1, 1]} : vector<4x6xf32> to vector<4x1xf32>
    %28 = vector.broadcast %27 : vector<4x1xf32> to vector<4x128xf32>
    %29 = arith.minimumf %26, %28 : vector<4x128xf32>
    %30 = math.exp %29 : vector<4x128xf32>
    %c0_3 = arith.constant 0 : index
    %c0_4 = arith.constant 0 : index
    %31 = vector.load %arg3[%c0_3, %c0_4] : memref<4x128xf32, #tpu.memory_space<vmem>>, vector<4x128xf32>
    tpu.vector_store %arg3[%c0_3, %c0_4], %30 {strides = array<i32>} : memref<4x128xf32, #tpu.memory_space<vmem>>, vector<4x128xf32>,
    return
  }
  func.func @transform_0(%arg0: i32) -> (i32, i32) {
    %c0_i32 = arith.constant 0 : i32
    %c0_i32_0 = arith.constant 0 : i32
    return %arg0, %c0_i32 : i32, i32
  }
  func.func @transform_1(%arg0: i32) -> (i32, i32) {
    %c0_i32 = arith.constant 0 : i32
    %c0_i32_0 = arith.constant 0 : i32
    %c0_i32_1 = arith.constant 0 : i32
    return %c0_i32, %c0_i32_0 : i32, i32
  }
  func.func @transform_2(%arg0: i32) -> (i32, i32) {
    %c0_i32 = arith.constant 0 : i32
    %c0_i32_0 = arith.constant 0 : i32
    return %arg0, %c0_i32 : i32, i32
  }
}

</mosaic_0001>

<bundles_post_ra>
// kernel: tpu_custom_call.1
= control target key start
LH: loop header
LB: loop body
LE: loop exit
PB: predicated region body
PF: predicated region fallthrough
CT: control target
= control target key end

     0   :  { %7 = vsyncpa [#allocation3], 0  ;;  %s201_s0 = inlined_call_operand.hbm [shape: f32[4,6], index: 0, kind: input, shape index: {}]   ;;  %s202_s1 = inlined_call_operand.vmem [shape: f32[2,128], index: 1, kind: input, shape index: {}]   ;;  %s203_s2 = inlined_call_operand.hbm [shape: f32[4,128], index: 2, kind: output, shape index: {}]  }
   0x1   :  { %8 = vsyncpa [#allocation4], 0  ;;  %s151_s9 = smov [#allocation2]   ;;  %s103_s13 = scalar_lea.hbm %s201_s0, 64 }
   0x2   :  { %s15_s10 = sshll.u32 %s151_s9, 4  ;;  %p104_p0 = scmp.ne.s32.totalorder %s201_s0, %s103_s13  ;;  %s16_s10 = int_to_ptr.vmem [resolvable:$true] %s15_s10 }
   0x3   :  { %p107_p1 = scmp.lt.u32.totalorder %s103_s13, %s201_s0 }
   0x5   :  { %p109_p2 = pnand %p107_p1, %p104_p0 }
   0x7   :  { %112 = shalt.err (!%p109_p2)
}
   0x8   :  { %s113_s18 = scalar_lea.vmem %s16_s10, 64  ;;  %p118_p4 = scmp.lt.s32.totalorder %s16_s10, %s16_s10 }
   0x9   :  { %p114_p3 = scmp.ne.s32.totalorder %s16_s10, %s113_s18  ;;  %p119_p5 = scmp.lt.s32.totalorder %s113_s18, %s113_s18 }
   0xb   :  { %p120_p6 = por %p119_p5, %p118_p4 }
   0xd   :  { %p121_p7 = pnand %p120_p6, %p114_p3 }
   0xf   :  { %124 = shalt.err (!%p121_p7)
}
  0x10   :  { %18 = dma.hbm_to_vmem [thread:$0]  %s201_s0, 64, %s16_s10, [#allocation3]  }
  0x11   :  { %147 = dma.done.wait [#allocation3], 64  }
  0x12   :  { %148 = vsyncadd [#allocation3], 4294967232  ;;  %v152_v0 = vmov 2   ;;  %v153_v1 = vmov 0   ;;  %v24_v2 = vld [vmem:[#allocation2] sm:$0xf]  ;;  %v26_v7 = vlaneseq }
  0x13   :  { %97 = vset.pattern.permute.xlu1 %v152_v0  ;;  %95 = vset.pattern.permute.xlu0 %v153_v1  ;;  %v154_v3 = vmov 4   ;;  %v155_v4 = vmov 1   ;;  %v156_v5 = vmov 3   ;;  %v157_v6 = vmov 5   ;;  %v25_v10 = vld [vmem:[%s202_s1] sm:$0x3] }
  0x14   :  { %46 = vperm.xlu1 %97, %v24_v2   ;;  %36 = vperm.xlu0 %95, %v24_v2   ;;  %v27_v8 = vshrl.u32 %v26_v7, 7  ;;  %s158_s1 = smov [#allocation5]  }
  0x15   :  { %s78_s22 = sshll.u32 %s158_s1, 4  ;;  %s79_s22 = int_to_ptr.vmem [resolvable:$true] %s78_s22 }
  0x16   :  { %v28_v9 = vsub.s32 0, %v27_v8  ;;  %v32_v11 = vsub.s32 1, %v27_v8  ;;  %s125_s23 = scalar_lea.vmem %s79_s22, 64  ;;  %p130_p9 = scmp.lt.s32.totalorder %s79_s22, %s79_s22 }
  0x17   :  { %p126_p8 = scmp.ne.s32.totalorder %s79_s22, %s125_s23  ;;  %p131_p10 = scmp.lt.s32.totalorder %s125_s23, %s125_s23 }
  0x18   :  { %98 = vset.pattern.permute.xlu1 %v154_v3  ;;  %96 = vset.pattern.permute.xlu0 %v155_v4  ;;  %v29_v12 = vrot.slane %v25_v10, %v28_v9  ;;  %v33_v15 = vrot.slane %v25_v10, %v32_v11 }
  0x19   :  { %51 = vperm.xlu1 %98, %v24_v2   ;;  %41 = vperm.xlu0 %96, %v24_v2   ;;  %p132_p11 = por %p131_p10, %p130_p9 }
  0x1b   :  { %p133_p12 = pnand %p132_p11, %p126_p8 }
  0x1d   :  { %99 = vset.pattern.permute.xlu1 %v156_v5  ;;  %100 = vset.pattern.permute.xlu0 %v157_v6 }
  0x1e   :  { %59 = vperm.xlu1 %99, %v24_v2   ;;  %65 = vperm.xlu0 %100, %v24_v2  }
  0x93   :  { %v37_v13 = vpop.permute.xlu0 %36  ;;  %v47_v14 = vpop.permute.xlu1 %46 }
  0x94   :  { %v39_v16 = vsub.f32 %v29_v12, %v37_v13 }
  0x96   :  { %v49_v20 = vmul.f32 %v47_v14, %v39_v16 }
  0x98   :  { %v42_v17 = vpop.permute.xlu0 %41  ;;  %v52_v18 = vpop.permute.xlu1 %51 }
  0x99   :  { %v44_v19 = vsub.f32 %v33_v15, %v42_v17 }
  0x9b   :  { %v54_v21 = vmul.f32 %v52_v18, %v44_v19  ;;  %v57_v22 = vmul.f32 %v44_v19, %v44_v19 }
  0x9d   :  { %v55_v23 = vadd.f32 %v54_v21, %v49_v20  ;;  %v60_v24 = vpop.permute.xlu1 %59  ;;  %v66_v27 = vpop.permute.xlu0 %65 }
  0x9e   :  { %v62_v25 = vmul.f32 %v60_v24, %v57_v22 }
  0x9f   :  { %v56_v26 = vmul.f32 %v55_v23, %v39_v16 }
  0xa1   :  { %v63_v28 = vadd.f32 %v62_v25, %v56_v26 }
  0xa3   :  { %v68_v29 = vmin.f32 %v63_v28, %v66_v27 }
  0xa5   :  { %v69_v30 = vmul.f32 1.442695, %v68_v29 }
  0xa7   :  { %101 = vpow2.f32 %v69_v30 }
  0xb1   :  { %v102_v31 = vpop.eup %101 }
  0xb2   :  { %71 = vst [vmem:[#allocation5] sm:$0xf] %v102_v31 }
  0xb3   :  { %136 = shalt.err (!%p133_p12)
}
  0xb4   :  { %s137_s26 = scalar_lea.hbm %s203_s2, 64 }
  0xb5   :  { %p138_p13 = scmp.ne.s32.totalorder %s203_s2, %s137_s26  ;;  %p141_p0 = scmp.lt.u32.totalorder %s137_s26, %s203_s2 }
  0xb7   :  { %p143_p1 = pnand %p141_p0, %p138_p13 }
  0xb9   :  { %146 = shalt.err (!%p143_p1)
}
  0xba   :  { %81 = dma.vmem_to_hbm [thread:$0]  %s79_s22, 64, %s203_s2, [#allocation4]  }
  0xbb   :  { %149 = dma.done.wait [#allocation4], 64  }
  0xbc   :  { %150 = vsyncadd [#allocation4], 4294967232 }
  0xbd   :  { %85 = vsyncpa [#allocation3], 1 }
  0xbe   :  { %86 = vsyncpa [#allocation4], 1 }

</bundles_post_ra>
